<compile_context>
chip_gen: v6e
topology: v6e:2x2x1
jax: 0.10.0
libtpu: 0.0.40
codegen_flags: <defaults>
</compile_context>

<pallas_src>
import jax
import jax.numpy as jnp
from jax.experimental import pallas as pl
from jax.experimental.pallas import tpu as pltpu

EPS = 1e-5     # nn.BatchNorm1d default eps
LANE = 128     # TPU vreg lane width


def _round_up(n, m):
    return ((n + m - 1) // m) * m


def _pad2d(a, rows, cols):
    r, c = a.shape
    return jnp.pad(a, ((0, rows - r), (0, cols - c)))


# ----------------------------------------------------------------------------
# Kernel
# ----------------------------------------------------------------------------
def mlp_kernel(x_ref, w1_ref, w2_ref, w3_ref, vec_ref, o_ref):
    # Static (compile-time) sizes from the ref shapes.
    H = w1_ref.shape[1]            # padded hidden width (multiple of 128)
    O = w3_ref.shape[1]            # padded output width (multiple of 128)
    x = x_ref[...]
    inv_b = 1.0 / x.shape[0]       # static batch size -> compile-time const

    # Single packed (8, P) slab of per-feature vectors; static, lane-aligned
    # slices (H, O are multiples of 128) are free.
    vec = vec_ref[...]
    b1, g1, be1 = vec[0:1, :H], vec[1:2, :H], vec[2:3, :H]
    b2, g2, be2 = vec[3:4, :H], vec[4:5, :H], vec[5:6, :H]
    b3 = vec[6:7, :O]

    def bn_relu_fused(h, g, be):
        # ReLU
        h = jnp.maximum(h, 0.0)
        # Two-pass (centered) batch stats: robust vs. cancellation; the extra
        # VALU work is free filler here (kernel is DMA/dispatch bound).
        mu = jnp.sum(h, axis=0, keepdims=True) * inv_b
        d = h - mu
        var = jnp.sum(d * d, axis=0, keepdims=True) * inv_b   # biased var
        # Fold BN into a single per-feature FMA.  Padded lanes: g=be=0 ->
        # scale=shift=0 -> h stays exactly zero (invariant: padded gamma/beta
        # MUST be zero, not one).
        scale = g * jax.lax.rsqrt(var + EPS)
        shift = be - mu * scale
        return h * scale + shift

    # ---- block1: Linear -> ReLU -> BatchNorm1d ----
    h = jnp.dot(x, w1_ref[...], preferred_element_type=jnp.float32) + b1
    h = bn_relu_fused(h, g1, be1)

    # ---- block2: Linear -> ReLU -> BatchNorm1d ----
    h = jnp.dot(h, w2_ref[...], preferred_element_type=jnp.float32) + b2
    h = bn_relu_fused(h, g2, be2)

    # ---- block3: Linear -> Sigmoid (single EUP tanh instead of exp+divide) ----
    z = jnp.dot(h, w3_ref[...], preferred_element_type=jnp.float32) + b3
    o_ref[...] = 0.5 * jnp.tanh(0.5 * z) + 0.5


# ----------------------------------------------------------------------------
# One-time parameter preparation (outside the per-call path)
# ----------------------------------------------------------------------------
def pad_and_pack_params(params):
    """Pad weight output dims to lane multiples and pack the seven per-feature
    vectors into a single (8, P) slab.  Call ONCE; reuse the result for every
    forward call."""
    (w1, b1, g1, be1, w2, b2, g2, be2, w3, b3) = params
    n_in, n_hidden = w1.shape
    n_out = w3.shape[1]

    h_p = _round_up(n_hidden, LANE)
    o_p = _round_up(n_out, LANE)
    P = max(h_p, o_p)

    # Contraction dims are NOT padded (n_in stays as-is); only output feature
    # dims are padded for lane density.  Zero-padded weight columns + zero
    # padded gamma/beta keep padded lanes identically zero through the net.
    w1_p = _pad2d(w1, n_in, h_p)
    w2_p = _pad2d(w2, h_p, h_p)          # pad input rows too (h is h_p wide)
    w3_p = _pad2d(w3, h_p, o_p)

    vec = jnp.zeros((8, P), jnp.float32)
    vec = vec.at[0, :n_hidden].set(b1[0])
    vec = vec.at[1, :n_hidden].set(g1[0])
    vec = vec.at[2, :n_hidden].set(be1[0])
    vec = vec.at[3, :n_hidden].set(b2[0])
    vec = vec.at[4, :n_hidden].set(g2[0])
    vec = vec.at[5, :n_hidden].set(be2[0])
    vec = vec.at[6, :n_out].set(b3[0])
    # row 7: spare (zeros)

    return (w1_p, w2_p, w3_p, vec)


# ----------------------------------------------------------------------------
# Forward wrapper
# ----------------------------------------------------------------------------
def mnist_model_forward(x, padded_params, n_out):
    """x: (B, n_in) f32.  padded_params: output of pad_and_pack_params.
    n_out: logical (unpadded) output width (static)."""
    w1_p, w2_p, w3_p, vec = padded_params
    B, n_in = x.shape
    h_p = w1_p.shape[1]
    o_p = w3_p.shape[1]

    args = (x, w1_p, w2_p, w3_p, vec)

    def full_spec(shape):
        return pl.BlockSpec(shape, lambda: (0,) * len(shape))

    in_specs = [full_spec(a.shape) for a in args]

    # Advisory cost hint for XLA's scheduler around the custom call.
    flops = 2 * B * (n_in * h_p + h_p * h_p + h_p * o_p) + 14 * B * h_p
    transcendentals = B * o_p + 2 * h_p            # tanh + rsqrt
    bytes_accessed = 4 * (sum(a.size for a in args) + B * o_p)
    cost = pl.CostEstimate(flops=flops, transcendentals=transcendentals,
                           bytes_accessed=bytes_accessed)

    out_p = pl.pallas_call(
        mlp_kernel,
        out_shape=jax.ShapeDtypeStruct((B, o_p), jnp.float32),
        in_specs=in_specs,
        out_specs=full_spec((B, o_p)),
        cost_estimate=cost,
    )(*args)

    # Drop padded output lanes outside the kernel (store inside is lane-dense).
    return out_p[:, :n_out]


# ----------------------------------------------------------------------------
# Deterministic synthetic init + pure-JAX reference
# ----------------------------------------------------------------------------
def init_params(key, n_in, n_hidden, n_out):
    ks = jax.random.split(key, 6)

    def lin(kw, kb, fan_in, fan_out):
        bound = 1.0 / jnp.sqrt(fan_in)
        w = jax.random.uniform(kw, (fan_in, fan_out), jnp.float32, -bound, bound)
        b = jax.random.uniform(kb, (1, fan_out), jnp.float32, -bound, bound)
        return w, b

    w1, b1 = lin(ks[0], ks[1], n_in, n_hidden)
    w2, b2 = lin(ks[2], ks[3], n_hidden, n_hidden)
    w3, b3 = lin(ks[4], ks[5], n_hidden, n_out)
    # BatchNorm1d defaults: weight=1, bias=0
    g1 = jnp.ones((1, n_hidden), jnp.float32)
    be1 = jnp.zeros((1, n_hidden), jnp.float32)
    g2 = jnp.ones((1, n_hidden), jnp.float32)
    be2 = jnp.zeros((1, n_hidden), jnp.float32)
    return (w1, b1, g1, be1, w2, b2, g2, be2, w3, b3)


def reference_forward(x, params):
    (w1, b1, g1, be1, w2, b2, g2, be2, w3, b3) = params

    def bn(h, g, be):
        mu = jnp.mean(h, axis=0, keepdims=True)
        var = jnp.mean((h - mu) ** 2, axis=0, keepdims=True)
        return (h - mu) * jax.lax.rsqrt(var + EPS) * g + be

    h = bn(jnp.maximum(x @ w1 + b1, 0.0), g1, be1)
    h = bn(jnp.maximum(h @ w2 + b2, 0.0), g2, be2)
    return jax.nn.sigmoid(h @ w3 + b3)


if __name__ == "__main__":
    # Batch of 128 rows: sublane-aligned, whole-batch BN stats stay exact.
    B, n_in, n_hidden, n_out = 128, 32, 32, 16
    key = jax.random.PRNGKey(0)
    kx, kp = jax.random.split(key)
    x = jax.random.normal(kx, (B, n_in), jnp.float32)

    params = init_params(kp, n_in, n_hidden, n_out)
    # Pad/pack the static params ONCE, outside the per-call path.
    padded_params = jax.block_until_ready(pad_and_pack_params(params))

    fwd = jax.jit(mnist_model_forward, static_argnums=2)
    out = fwd(x, padded_params, n_out)
    out = jax.block_until_ready(out)

    ref = reference_forward(x, params)
    assert out.shape == (B, n_out)
    assert jnp.allclose(out, ref, atol=1e-4, rtol=1e-4)
    # TODO(synk): BatchNorm1d running_mean/running_var buffer updates (stateful
    # training-side bookkeeping) are not reproduced; forward output is exact.
    print("KERNEL_OK")
</pallas_src>

<mosaic_0001>
module attributes {stable_mosaic.version = 11 : i64} {
  func.func @mlp_kernel(%arg0: memref<128x32xf32, #tpu.memory_space<vmem>>, %arg1: memref<32x128xf32, #tpu.memory_space<vmem>>, %arg2: memref<128x128xf32, #tpu.memory_space<vmem>>, %arg3: memref<128x128xf32, #tpu.memory_space<vmem>>, %arg4: memref<8x128xf32, #tpu.memory_space<vmem>>, %arg5: memref<128x128xf32, #tpu.memory_space<vmem>>) attributes {dimension_semantics = [], scalar_prefetch = 0 : i64, scratch_operands = 0 : i64, tpu.core_type = #tpu.core_type<tc>} {
    %c0 = arith.constant 0 : index
    %c0_0 = arith.constant 0 : index
    %0 = vector.load %arg0[%c0, %c0_0] : memref<128x32xf32, #tpu.memory_space<vmem>>, vector<128x32xf32>
    %c0_1 = arith.constant 0 : index
    %c0_2 = arith.constant 0 : index
    %1 = vector.load %arg4[%c0_1, %c0_2] : memref<8x128xf32, #tpu.memory_space<vmem>>, vector<8x128xf32>
    %2 = vector.extract_strided_slice %1 {offsets = [0, 0], sizes = [1, 128], strides = [1, 1]} : vector<8x128xf32> to vector<1x128xf32>
    %3 = vector.extract_strided_slice %1 {offsets = [1, 0], sizes = [1, 128], strides = [1, 1]} : vector<8x128xf32> to vector<1x128xf32>
    %4 = vector.extract_strided_slice %1 {offsets = [2, 0], sizes = [1, 128], strides = [1, 1]} : vector<8x128xf32> to vector<1x128xf32>
    %5 = vector.extract_strided_slice %1 {offsets = [3, 0], sizes = [1, 128], strides = [1, 1]} : vector<8x128xf32> to vector<1x128xf32>
    %6 = vector.extract_strided_slice %1 {offsets = [4, 0], sizes = [1, 128], strides = [1, 1]} : vector<8x128xf32> to vector<1x128xf32>
    %7 = vector.extract_strided_slice %1 {offsets = [5, 0], sizes = [1, 128], strides = [1, 1]} : vector<8x128xf32> to vector<1x128xf32>
    %8 = vector.extract_strided_slice %1 {offsets = [6, 0], sizes = [1, 128], strides = [1, 1]} : vector<8x128xf32> to vector<1x128xf32>
    %c0_3 = arith.constant 0 : index
    %c0_4 = arith.constant 0 : index
    %9 = vector.load %arg1[%c0_3, %c0_4] : memref<32x128xf32, #tpu.memory_space<vmem>>, vector<32x128xf32>
    %cst = arith.constant dense<0.000000e+00> : vector<128x128xf32>
    %10 = tpu.matmul %0, %9, %cst {dimension_numbers = #tpu.dot_dimension_numbers<[1], [0], [0], [1], [0, 0, 1, 1], [], []>} : vector<128x32xf32>, vector<32x128xf32>, vector<128x128xf32> -> vector<128x128xf32>
    %11 = vector.broadcast %2 : vector<1x128xf32> to vector<128x128xf32>
    %12 = arith.addf %10, %11 : vector<128x128xf32>
    %cst_5 = arith.constant 0.000000e+00 : f32
    %13 = vector.broadcast %cst_5 : f32 to vector<128x128xf32>
    %14 = arith.maximumf %12, %13 : vector<128x128xf32>
    %cst_6 = arith.constant dense<0.000000e+00> : vector<128xf32>
    %15 = vector.multi_reduction <add>, %14, %cst_6 [0] : vector<128x128xf32> to vector<128xf32>
    %16 = vector.shape_cast %15 : vector<128xf32> to vector<1x128xf32>
    %cst_7 = arith.constant 7.812500e-03 : f32
    %17 = vector.broadcast %cst_7 : f32 to vector<1x128xf32>
    %18 = arith.mulf %16, %17 : vector<1x128xf32>
    %19 = vector.broadcast %18 : vector<1x128xf32> to vector<128x128xf32>
    %20 = arith.subf %14, %19 : vector<128x128xf32>
    %21 = arith.mulf %20, %20 : vector<128x128xf32>
    %cst_8 = arith.constant dense<0.000000e+00> : vector<128xf32>
    %22 = vector.multi_reduction <add>, %21, %cst_8 [0] : vector<128x128xf32> to vector<128xf32>
    %23 = vector.shape_cast %22 : vector<128xf32> to vector<1x128xf32>
    %cst_9 = arith.constant 7.812500e-03 : f32
    %24 = vector.broadcast %cst_9 : f32 to vector<1x128xf32>
    %25 = arith.mulf %23, %24 : vector<1x128xf32>
    %cst_10 = arith.constant 9.99999974E-6 : f32
    %26 = vector.broadcast %cst_10 : f32 to vector<1x128xf32>
    %27 = arith.addf %25, %26 : vector<1x128xf32>
    %28 = math.rsqrt %27 : vector<1x128xf32>
    %29 = arith.mulf %3, %28 : vector<1x128xf32>
    %30 = arith.mulf %18, %29 : vector<1x128xf32>
    %31 = arith.subf %4, %30 : vector<1x128xf32>
    %32 = vector.broadcast %29 : vector<1x128xf32> to vector<128x128xf32>
    %33 = arith.mulf %14, %32 : vector<128x128xf32>
    %34 = vector.broadcast %31 : vector<1x128xf32> to vector<128x128xf32>
    %35 = arith.addf %33, %34 : vector<128x128xf32>
    %c0_11 = arith.constant 0 : index
    %c0_12 = arith.constant 0 : index
    %36 = vector.load %arg2[%c0_11, %c0_12] : memref<128x128xf32, #tpu.memory_space<vmem>>, vector<128x128xf32>
    %cst_13 = arith.constant dense<0.000000e+00> : vector<128x128xf32>
    %37 = tpu.matmul %35, %36, %cst_13 {dimension_numbers = #tpu.dot_dimension_numbers<[1], [0], [0], [1], [0, 0, 1, 1], [], []>} : vector<128x128xf32>, vector<128x128xf32>, vector<128x128xf32> -> vector<128x128xf32>
    %38 = vector.broadcast %5 : vector<1x128xf32> to vector<128x128xf32>
    %39 = arith.addf %37, %38 : vector<128x128xf32>
    %cst_14 = arith.constant 0.000000e+00 : f32
    %40 = vector.broadcast %cst_14 : f32 to vector<128x128xf32>
    %41 = arith.maximumf %39, %40 : vector<128x128xf32>
    %cst_15 = arith.constant dense<0.000000e+00> : vector<128xf32>
    %42 = vector.multi_reduction <add>, %41, %cst_15 [0] : vector<128x128xf32> to vector<128xf32>
    %43 = vector.shape_cast %42 : vector<128xf32> to vector<1x128xf32>
    %cst_16 = arith.constant 7.812500e-03 : f32
    %44 = vector.broadcast %cst_16 : f32 to vector<1x128xf32>
    %45 = arith.mulf %43, %44 : vector<1x128xf32>
    %46 = vector.broadcast %45 : vector<1x128xf32> to vector<128x128xf32>
    %47 = arith.subf %41, %46 : vector<128x128xf32>
    %48 = arith.mulf %47, %47 : vector<128x128xf32>
    %cst_17 = arith.constant dense<0.000000e+00> : vector<128xf32>
    %49 = vector.multi_reduction <add>, %48, %cst_17 [0] : vector<128x128xf32> to vector<128xf32>
    %50 = vector.shape_cast %49 : vector<128xf32> to vector<1x128xf32>
    %cst_18 = arith.constant 7.812500e-03 : f32
    %51 = vector.broadcast %cst_18 : f32 to vector<1x128xf32>
    %52 = arith.mulf %50, %51 : vector<1x128xf32>
    %cst_19 = arith.constant 9.99999974E-6 : f32
    %53 = vector.broadcast %cst_19 : f32 to vector<1x128xf32>
    %54 = arith.addf %52, %53 : vector<1x128xf32>
    %55 = math.rsqrt %54 : vector<1x128xf32>
    %56 = arith.mulf %6, %55 : vector<1x128xf32>
    %57 = arith.mulf %45, %56 : vector<1x128xf32>
    %58 = arith.subf %7, %57 : vector<1x128xf32>
    %59 = vector.broadcast %56 : vector<1x128xf32> to vector<128x128xf32>
    %60 = arith.mulf %41, %59 : vector<128x128xf32>
    %61 = vector.broadcast %58 : vector<1x128xf32> to vector<128x128xf32>
    %62 = arith.addf %60, %61 : vector<128x128xf32>
    %c0_20 = arith.constant 0 : index
    %c0_21 = arith.constant 0 : index
    %63 = vector.load %arg3[%c0_20, %c0_21] : memref<128x128xf32, #tpu.memory_space<vmem>>, vector<128x128xf32>
    %cst_22 = arith.constant dense<0.000000e+00> : vector<128x128xf32>
    %64 = tpu.matmul %62, %63, %cst_22 {dimension_numbers = #tpu.dot_dimension_numbers<[1], [0], [0], [1], [0, 0, 1, 1], [], []>} : vector<128x128xf32>, vector<128x128xf32>, vector<128x128xf32> -> vector<128x128xf32>
    %65 = vector.broadcast %8 : vector<1x128xf32> to vector<128x128xf32>
    %66 = arith.addf %64, %65 : vector<128x128xf32>
    %cst_23 = arith.constant 5.000000e-01 : f32
    %67 = vector.broadcast %cst_23 : f32 to vector<128x128xf32>
    %68 = arith.mulf %67, %66 : vector<128x128xf32>
    %69 = math.tanh %68 : vector<128x128xf32>
    %cst_24 = arith.constant 5.000000e-01 : f32
    %70 = vector.broadcast %cst_24 : f32 to vector<128x128xf32>
    %71 = arith.mulf %70, %69 : vector<128x128xf32>
    %cst_25 = arith.constant 5.000000e-01 : f32
    %72 = vector.broadcast %cst_25 : f32 to vector<128x128xf32>
    %73 = arith.addf %71, %72 : vector<128x128xf32>
    %c0_26 = arith.constant 0 : index
    %c0_27 = arith.constant 0 : index
    %74 = vector.load %arg5[%c0_26, %c0_27] : memref<128x128xf32, #tpu.memory_space<vmem>>, vector<128x128xf32>
    tpu.vector_store %arg5[%c0_26, %c0_27], %73 {strides = array<i32>} : memref<128x128xf32, #tpu.memory_space<vmem>>, vector<128x128xf32>,
    return
  }
}

</mosaic_0001>

<bundles_post_ra>
// kernel: mnist_model_forward.1
= control target key start
LH: loop header
LB: loop body
LE: loop exit
PB: predicated region body
PF: predicated region fallthrough
CT: control target
= control target key end

     0   :  { %10 = vsyncpa [#allocation3], 0  ;;  %s1765_s0 = inlined_call_operand.vmem [shape: f32[128,32], index: 0, kind: input, shape index: {}]   ;;  %s1766_s1 = inlined_call_operand.vmem [shape: f32[32,128], index: 1, kind: input, shape index: {}]   ;;  %s1767_s2 = inlined_call_operand.vmem [shape: f32[128,128], index: 2, kind: input, shape index: {}]   ;;  %s1768_s3 = inlined_call_operand.hbm [shape: f32[128,128], index: 3, kind: input, shape index: {}]   ;;  %s1769_s4 = inlined_call_operand.hbm [shape: f32[8,128], index: 4, kind: input, shape index: {}]   ;;  %s1770_s5 = inlined_call_operand.vmem [shape: f32[128,128], index: 5, kind: output, shape index: {}]  }
   0x1   :  { %11 = vsyncpa [#allocation5], 0  ;;  %s1321_s18 = smov [#allocation2]  }
   0x2   :  { %s23_s19 = sshll.u32 %s1321_s18, 4  ;;  %s24_s19 = int_to_ptr.vmem [resolvable:$true] %s23_s19 }
   0x3   :  { %s1285_s20 = scalar_lea.vmem %s24_s19, 2048  ;;  %p1290_p1 = scmp.lt.s32.totalorder %s24_s19, %s24_s19 }
   0x4   :  { %p1286_p0 = scmp.ne.s32.totalorder %s24_s19, %s1285_s20  ;;  %p1291_p2 = scmp.lt.s32.totalorder %s1285_s20, %s1285_s20 }
   0x6   :  { %p1292_p3 = por %p1291_p2, %p1290_p1 }
   0x8   :  { %p1293_p4 = pnand %p1292_p3, %p1286_p0 }
   0xa   :  { %1296 = shalt.err (!%p1293_p4)
}
   0xb   :  { %s1322_s21 = smov 128   ;;  %s1323_s22 = smov 8  }
   0xc   :  { %29 = dma.hbm_to_vmem [thread:$0]  %s1768_s3, 2048, %s24_s19, [#allocation3], %s1322_s21, %s1322_s21, %s1323_s22  }
   0xd   :  { %s1324_s25 = smov [#allocation4]  }
   0xe   :  { %s36_s26 = sshll.u32 %s1324_s25, 4  ;;  %s37_s26 = int_to_ptr.vmem [resolvable:$true] %s36_s26 }
   0xf   :  { %s1305_s27 = scalar_lea.vmem %s37_s26, 128  ;;  %p1310_p6 = scmp.lt.s32.totalorder %s37_s26, %s37_s26 }
  0x10   :  { %p1306_p5 = scmp.ne.s32.totalorder %s37_s26, %s1305_s27  ;;  %p1311_p7 = scmp.lt.s32.totalorder %s1305_s27, %s1305_s27 }
  0x12   :  { %p1312_p8 = por %p1311_p7, %p1310_p6 }
  0x14   :  { %p1313_p9 = pnand %p1312_p8, %p1306_p5 }
  0x16   :  { %1316 = shalt.err (!%p1313_p9)
}
  0x17   :  { %39 = dma.hbm_to_vmem [thread:$0]  %s1769_s4, 128, %s37_s26, [#allocation5]  }
  0x18   :  { %1317 = dma.done.wait [#allocation3], 2048  }
  0x19   :  { %1318 = vsyncadd [#allocation3], 4294965248 }
  0x1a   :  { %1319 = dma.done.wait [#allocation5], 128  }
  0x1b   :  { %1320 = vsyncadd [#allocation5], 4294967168  ;;  %vm71_vm0 = vcmask 261120   ;;  %v66_v0 = vld [vmem:[%s1766_s1 + $0x18] sm:$0xff]  ;;  %v65_v1 = vld [vmem:[%s1766_s1 + $0x10] sm:$0xff]  ;;  %v67_v27 = vlaneseq }
  0x1c   :  { %1061 = vmatprep.subr.mxu0 %v66_v0  ;;  %v46_v2 = vld [vmem:[%s1765_s0] sm:$0xff]  ;;  %v64_v3 = vld [vmem:[%s1766_s1 + $0x8] sm:$0xff]  ;;  %v48_v6 = vld [vmem:[%s1765_s0 + $0x10] sm:$0xff] }
  0x1d   :  { %1062 = vmatpush3.msra.mxu0 %v66_v0  ;;  %1069 = vmatprep.mubr.msk.f32.mxu0 %vm71_vm0, %v46_v2  ;;  %v63_v4 = vld [vmem:[%s1766_s1] sm:$0xff]  ;;  %v47_v5 = vld [vmem:[%s1765_s0 + $0x8] sm:$0xff]  ;;  %v49_v7 = vld [vmem:[%s1765_s0 + $0x18] sm:$0xff]  ;;  %v1464_v30 = vshrl.u32 %v67_v27, 7 }
  0x1e   :  { %1063 = vmatprep.subr.mxu0 %v65_v1  ;;  %v50_v8 = vld [vmem:[%s1765_s0 + $0x20] sm:$0xff]  ;;  %v51_v9 = vld [vmem:[%s1765_s0 + $0x28] sm:$0xff]  ;;  %v52_v10 = vld [vmem:[%s1765_s0 + $0x30] sm:$0xff] }
  0x1f   :  { %1064 = vmatpush3.msra.mxu0 %v65_v1  ;;  %v53_v11 = vld [vmem:[%s1765_s0 + $0x38] sm:$0xff]  ;;  %v54_v12 = vld [vmem:[%s1765_s0 + $0x40] sm:$0xff]  ;;  %v55_v13 = vld [vmem:[%s1765_s0 + $0x48] sm:$0xff]  ;;  %v69_v33 = vsub.s32 0, %v1464_v30 }
  0x20   :  { %1065 = vmatprep.subr.mxu0 %v64_v3  ;;  %v56_v14 = vld [vmem:[%s1765_s0 + $0x50] sm:$0xff]  ;;  %v57_v15 = vld [vmem:[%s1765_s0 + $0x58] sm:$0xff]  ;;  %v58_v16 = vld [vmem:[%s1765_s0 + $0x60] sm:$0xff] }
  0x21   :  { %1066 = vmatpush3.msra.mxu0 %v64_v3  ;;  %v59_v17 = vld [vmem:[%s1765_s0 + $0x68] sm:$0xff]  ;;  %v60_v18 = vld [vmem:[%s1765_s0 + $0x70] sm:$0xff]  ;;  %v61_v19 = vld [vmem:[%s1765_s0 + $0x78] sm:$0xff] }
  0x22   :  { %1067 = vmatprep.subr.mxu0 %v63_v4  ;;  %v420_v20 = vld [vmem:[%s1767_s2 + $0x78] sm:$0xff]  ;;  %v419_v21 = vld [vmem:[%s1767_s2 + $0x70] sm:$0xff]  ;;  %v418_v22 = vld [vmem:[%s1767_s2 + $0x68] sm:$0xff] }
  0x23   :  { %1068 = vmatpush3.msra.mxu0 %v63_v4  ;;  %1093 = vmatprep.subr.mxu1 %v420_v20  ;;  %v417_v23 = vld [vmem:[%s1767_s2 + $0x60] sm:$0xff]  ;;  %v416_v24 = vld [vmem:[%s1767_s2 + $0x58] sm:$0xff]  ;;  %v415_v25 = vld [vmem:[%s1767_s2 + $0x50] sm:$0xff] }
  0x24   :  { %1070 = vmatmul.mubr.msk.f32.vlgmr.msra.gmra.mxu0 %vm71_vm0, %v47_v5  ;;  %1094 = vmatpush3.msra.mxu1 %v420_v20  ;;  %v414_v26 = vld [vmem:[%s1767_s2 + $0x48] sm:$0xff]  ;;  %v413_v28 = vld [vmem:[%s1767_s2 + $0x40] sm:$0xff]  ;;  %v412_v29 = vld [vmem:[%s1767_s2 + $0x38] sm:$0xff] }
  0x25   :  { %1072 = vmatprep.mubr.msk.f32.mxu0 %vm71_vm0, %v48_v6  ;;  %1095 = vmatprep.subr.mxu1 %v419_v21  ;;  %v411_v31 = vld [vmem:[%s1767_s2 + $0x30] sm:$0xff]  ;;  %v410_v32 = vld [vmem:[%s1767_s2 + $0x28] sm:$0xff]  ;;  %v1473_v34 = vld [vmem:[#allocation4] sm:$0xff] }
  0x26   :  { %1096 = vmatpush3.msra.mxu1 %v419_v21  ;;  %v409_v35 = vld [vmem:[%s1767_s2 + $0x20] sm:$0xff]  ;;  %v408_v36 = vld [vmem:[%s1767_s2 + $0x18] sm:$0xff]  ;;  %v1482_v37 = vrot.slane %v1473_v34, %v69_v33  ;;  %v407_v39 = vld [vmem:[%s1767_s2 + $0x10] sm:$0xff] }
  0x27   :  { %1097 = vmatprep.subr.mxu1 %v418_v22  ;;  %v406_v40 = vld [vmem:[%s1767_s2 + $0x8] sm:$0xff]  ;;  %v405_v42 = vld [vmem:[%s1767_s2] sm:$0xff] }
  0x28   :  { %1073 = vmatmul.mubr.msk.f32.gmra.mxu0 %vm71_vm0, %v49_v7  ;;  %1098 = vmatpush3.msra.mxu1 %v418_v22 }
  0x29   :  { %1075 = vmatprep.mubr.msk.f32.mxu0 %vm71_vm0, %v50_v8  ;;  %1099 = vmatprep.subr.mxu1 %v417_v23 }
  0x2a   :  { %1100 = vmatpush3.msra.mxu1 %v417_v23 }
  0x2b   :  { %1101 = vmatprep.subr.mxu1 %v416_v24 }
  0x2c   :  { %1076 = vmatmul.mubr.msk.f32.gmra.mxu0 %vm71_vm0, %v51_v9  ;;  %1102 = vmatpush3.msra.mxu1 %v416_v24 }
  0x2d   :  { %1078 = vmatprep.mubr.msk.f32.mxu0 %vm71_vm0, %v52_v10  ;;  %1103 = vmatprep.subr.mxu1 %v415_v25 }
  0x2e   :  { %1104 = vmatpush3.msra.mxu1 %v415_v25 }
  0x2f   :  { %1105 = vmatprep.subr.mxu1 %v414_v26 }
  0x30   :  { %1079 = vmatmul.mubr.msk.f32.gmra.mxu0 %vm71_vm0, %v53_v11  ;;  %1106 = vmatpush3.msra.mxu1 %v414_v26 }
  0x31   :  { %1081 = vmatprep.mubr.msk.f32.mxu0 %vm71_vm0, %v54_v12  ;;  %1107 = vmatprep.subr.mxu1 %v413_v28 }
  0x32   :  { %1108 = vmatpush3.msra.mxu1 %v413_v28 }
  0x33   :  { %1109 = vmatprep.subr.mxu1 %v412_v29 }
  0x34   :  { %1082 = vmatmul.mubr.msk.f32.gmra.mxu0 %vm71_vm0, %v55_v13  ;;  %1110 = vmatpush3.msra.mxu1 %v412_v29 }
  0x35   :  { %1084 = vmatprep.mubr.msk.f32.mxu0 %vm71_vm0, %v56_v14  ;;  %1111 = vmatprep.subr.mxu1 %v411_v31 }
  0x36   :  { %1112 = vmatpush3.msra.mxu1 %v411_v31 }
  0x37   :  { %1113 = vmatprep.subr.mxu1 %v410_v32 }
  0x38   :  { %1085 = vmatmul.mubr.msk.f32.gmra.mxu0 %vm71_vm0, %v57_v15  ;;  %1114 = vmatpush3.msra.mxu1 %v410_v32 }
  0x39   :  { %1087 = vmatprep.mubr.msk.f32.mxu0 %vm71_vm0, %v58_v16  ;;  %1115 = vmatprep.subr.mxu1 %v409_v35 }
  0x3a   :  { %1116 = vmatpush3.msra.mxu1 %v409_v35 }
  0x3b   :  { %1117 = vmatprep.subr.mxu1 %v408_v36 }
  0x3c   :  { %1088 = vmatmul.mubr.msk.f32.gmra.mxu0 %vm71_vm0, %v59_v17  ;;  %1118 = vmatpush3.msra.mxu1 %v408_v36 }
  0x3d   :  { %1090 = vmatprep.mubr.msk.f32.mxu0 %vm71_vm0, %v60_v18  ;;  %1119 = vmatprep.subr.mxu1 %v407_v39 }
  0x3e   :  { %1120 = vmatpush3.msra.mxu1 %v407_v39 }
  0x3f   :  { %1121 = vmatprep.subr.mxu1 %v406_v40 }
  0x40   :  { %1091 = vmatmul.mubr.msk.f32.gmra.mxu0 %vm71_vm0, %v61_v19  ;;  %1122 = vmatpush3.msra.mxu1 %v406_v40 }
  0x41   :  { %1123 = vmatprep.subr.mxu1 %v405_v42 }
  0x42   :  { %1124 = vmatpush3.msra.mxu1 %v405_v42 }
  0xe4   :  { %v1071_v38 = vpop.f32.mrf.mxu0 }
  0xe5   :  { %v192_v43 = vadd.f32 %v1071_v38, %v1482_v37 }
  0xe6   :  { %v186_v41 = vpop.f32.mrf.mxu0 }
  0xe7   :  { %v187_v44 = vadd.f32 %v186_v41, %v1482_v37  ;;  %v1497_v48 = vmax.f32 %v192_v43, 0.0 }
  0xe8   :  { %v1074_v45 = vpop.f32.mrf.mxu0 }
  0xe9   :  { %v1495_v46 = vmax.f32 %v187_v44, 0.0  ;;  %v202_v49 = vadd.f32 %v1074_v45, %v1482_v37 }
  0xea   :  { %v196_v47 = vpop.f32.mrf.mxu0 }
  0xeb   :  { %v197_v50 = vadd.f32 %v196_v47, %v1482_v37  ;;  %v281_v52 = vadd.f32 %v1497_v48, %v1495_v46  ;;  %v1505_v55 = vmax.f32 %v202_v49, 0.0 }
  0xec   :  { %v1077_v51 = vpop.f32.mrf.mxu0 }
  0xed   :  { %v1503_v53 = vmax.f32 %v197_v50, 0.0  ;;  %v212_v57 = vadd.f32 %v1077_v51, %v1482_v37 }
  0xee   :  { %v206_v54 = vpop.f32.mrf.mxu0 }
  0xef   :  { %v282_v56 = vadd.f32 %v281_v52, %v1503_v53  ;;  %v207_v58 = vadd.f32 %v206_v54, %v1482_v37  ;;  %v1513_v63 = vmax.f32 %v212_v57, 0.0 }
  0xf0   :  { %v1080_v59 = vpop.f32.mrf.mxu0 }
  0xf1   :  { %v1510_v60 = vmax.f32 %v207_v58, 0.0  ;;  %v283_v61 = vadd.f32 %v282_v56, %v1505_v55  ;;  %v222_v1 = vadd.f32 %v1080_v59, %v1482_v37 }
  0xf2   :  { %v216_v62 = vpop.f32.mrf.mxu0 }
  0xf3   :  { %v284_v0 = vadd.f32 %v283_v61, %v1510_v60  ;;  %v217_v2 = vadd.f32 %v216_v62, %v1482_v37  ;;  %v1521_v7 = vmax.f32 %v222_v1, 0.0 }
  0xf4   :  { %v1083_v3 = vpop.f32.mrf.mxu0 }
  0xf5   :  { %v1518_v4 = vmax.f32 %v217_v2, 0.0  ;;  %v285_v5 = vadd.f32 %v284_v0, %v1513_v63  ;;  %v232_v9 = vadd.f32 %v1083_v3, %v1482_v37 }
  0xf6   :  { %v226_v6 = vpop.f32.mrf.mxu0 }
  0xf7   :  { %v286_v8 = vadd.f32 %v285_v5, %v1518_v4  ;;  %v227_v10 = vadd.f32 %v226_v6, %v1482_v37  ;;  %v1529_v15 = vmax.f32 %v232_v9, 0.0 }
  0xf8   :  { %v1086_v11 = vpop.f32.mrf.mxu0 }
  0xf9   :  { %v1526_v12 = vmax.f32 %v227_v10, 0.0  ;;  %v287_v13 = vadd.f32 %v286_v8, %v1521_v7  ;;  %v242_v17 = vadd.f32 %v1086_v11, %v1482_v37 }
  0xfa   :  { %v236_v14 = vpop.f32.mrf.mxu0 }
  0xfb   :  { %v288_v16 = vadd.f32 %v287_v13, %v1526_v12  ;;  %v237_v18 = vadd.f32 %v236_v14, %v1482_v37  ;;  %v1537_v23 = vmax.f32 %v242_v17, 0.0 }
  0xfc   :  { %v1089_v19 = vpop.f32.mrf.mxu0 }
  0xfd   :  { %v1534_v20 = vmax.f32 %v237_v18, 0.0  ;;  %v289_v21 = vadd.f32 %v288_v16, %v1529_v15  ;;  %v252_v25 = vadd.f32 %v1089_v19, %v1482_v37 }
  0xfe   :  { %v246_v22 = vpop.f32.mrf.mxu0 }
  0xff   :  { %v290_v24 = vadd.f32 %v289_v21, %v1534_v20  ;;  %v247_v26 = vadd.f32 %v246_v22, %v1482_v37  ;;  %v1545_v32 = vmax.f32 %v252_v25, 0.0 }
 0x100   :  { %v1092_v27 = vpop.f32.mrf.mxu0 }
 0x101   :  { %v1542_v28 = vmax.f32 %v247_v26, 0.0  ;;  %v291_v29 = vadd.f32 %v290_v24, %v1537_v23  ;;  %v262_v35 = vadd.f32 %v1092_v27, %v1482_v37 }
 0x102   :  { %v256_v31 = vpop.f32.mrf.mxu0 }
 0x103   :  { %v292_v33 = vadd.f32 %v291_v29, %v1542_v28  ;;  %v257_v36 = vadd.f32 %v256_v31, %v1482_v37  ;;  %v1553_v40 = vmax.f32 %v262_v35, 0.0 }
 0x105   :  { %v1550_v38 = vmax.f32 %v257_v36, 0.0  ;;  %v293_v39 = vadd.f32 %v292_v33, %v1545_v32 }
 0x107   :  { %v294_v41 = vadd.f32 %v293_v39, %v1550_v38 }
 0x109   :  { %v295_v42 = vadd.f32 %v294_v41, %v1553_v40 }
 0x10b   :  { %v296_v43 = vrot.slane %v295_v42, 4 }
 0x10d   :  { %v297_v44 = vadd.f32 %v296_v43, %v295_v42 }
 0x10f   :  { %v298_v45 = vrot.slane %v297_v44, 2 }
 0x111   :  { %v299_v47 = vadd.f32 %v298_v45, %v297_v44 }
 0x113   :  { %v300_v49 = vrot.slane %v299_v47, 1 }
 0x115   :  { %v301_v50 = vadd.f32 %v300_v49, %v299_v47 }
 0x117   :  { %v302_v51 = vmul.f32 0.0078125, %v301_v50 }
 0x119   :  { %v303_v52 = vsub.f32 %v1495_v46, %v302_v51  ;;  %v304_v37 = vsub.f32 %v1497_v48, %v302_v51  ;;  %v305_v54 = vsub.f32 %v1503_v53, %v302_v51  ;;  %v306_v58 = vsub.f32 %v1505_v55, %v302_v51 }
 0x11a   :  { %v307_v59 = vsub.f32 %v1510_v60, %v302_v51  ;;  %v308_v0 = vsub.f32 %v1513_v63, %v302_v51  ;;  %v309_v3 = vsub.f32 %v1518_v4, %v302_v51  ;;  %v310_v8 = vsub.f32 %v1521_v7, %v302_v51 }
 0x11b   :  { %v319_v56 = vmul.f32 %v303_v52, %v303_v52  ;;  %v320_v57 = vmul.f32 %v304_v37, %v304_v37  ;;  %v321_v61 = vmul.f32 %v305_v54, %v305_v54  ;;  %v322_v1 = vmul.f32 %v306_v58, %v306_v58 }
 0x11c   :  { %v323_v5 = vmul.f32 %v307_v59, %v307_v59  ;;  %v324_v9 = vmul.f32 %v308_v0, %v308_v0  ;;  %v311_v11 = vsub.f32 %v1526_v12, %v302_v51  ;;  %v325_v13 = vmul.f32 %v309_v3, %v309_v3 }
 0x11d   :  { %v335_v62 = vadd.f32 %v320_v57, %v319_v56  ;;  %v312_v16 = vsub.f32 %v1529_v15, %v302_v51  ;;  %v326_v17 = vmul.f32 %v310_v8, %v310_v8  ;;  %v313_v19 = vsub.f32 %v1534_v20, %v302_v51 }
 0x11e   :  { %v327_v21 = vmul.f32 %v311_v11, %v311_v11  ;;  %v314_v24 = vsub.f32 %v1537_v23, %v302_v51  ;;  %v315_v27 = vsub.f32 %v1542_v28, %v302_v51  ;;  %v316_v33 = vsub.f32 %v1545_v32, %v302_v51 }
 0x11f   :  { %v336_v2 = vadd.f32 %v335_v62, %v321_v61  ;;  %v328_v25 = vmul.f32 %v312_v16, %v312_v16  ;;  %v329_v29 = vmul.f32 %v313_v19, %v313_v19  ;;  %v317_v39 = vsub.f32 %v1550_v38, %v302_v51 }
 0x120   :  { %v330_v35 = vmul.f32 %v314_v24, %v314_v24  ;;  %v331_v41 = vmul.f32 %v315_v27, %v315_v27  ;;  %v318_v43 = vsub.f32 %v1553_v40, %v302_v51  ;;  %v332_v44 = vmul.f32 %v316_v33, %v316_v33 }
 0x121   :  { %v337_v6 = vadd.f32 %v336_v2, %v322_v1  ;;  %v333_v47 = vmul.f32 %v317_v39, %v317_v39  ;;  %v367_v3 = vsub.s32 1, %v1464_v30 }
 0x122   :  { %v334_v50 = vmul.f32 %v318_v43, %v318_v43  ;;  %v720_v43 = vld [vmem:[#allocation2 + $0x50] sm:$0xff] }
 0x123   :  { %v338_v10 = vadd.f32 %v337_v6, %v323_v5 }
 0x125   :  { %v339_v14 = vadd.f32 %v338_v10, %v324_v9  ;;  %v387_v9 = vsub.s32 2, %v1464_v30 }
 0x127   :  { %v340_v18 = vadd.f32 %v339_v14, %v325_v13 }
 0x129   :  { %v341_v22 = vadd.f32 %v340_v18, %v326_v17 }
 0x12b   :  { %v342_v26 = vadd.f32 %v341_v22, %v327_v21 }
 0x12d   :  { %v343_v31 = vadd.f32 %v342_v26, %v328_v25 }
 0x12f   :  { %v344_v36 = vadd.f32 %v343_v31, %v329_v29 }
 0x131   :  { %v345_v42 = vadd.f32 %v344_v36, %v330_v35 }
 0x133   :  { %v346_v45 = vadd.f32 %v345_v42, %v331_v41 }
 0x135   :  { %v347_v49 = vadd.f32 %v346_v45, %v332_v44  ;;  %v719_v44 = vld [vmem:[#allocation2 + $0x48] sm:$0xff]  ;;  %v718_v45 = vld [vmem:[#allocation2 + $0x40] sm:$0xff] }
 0x137   :  { %v348_v52 = vadd.f32 %v347_v49, %v333_v47  ;;  %v717_v47 = vld [vmem:[#allocation2 + $0x38] sm:$0xff]  ;;  %v716_v49 = vld [vmem:[#allocation2 + $0x30] sm:$0xff] }
 0x139   :  { %v349_v37 = vadd.f32 %v348_v52, %v334_v50  ;;  %v715_v50 = vld [vmem:[#allocation2 + $0x28] sm:$0xff]  ;;  %v423_v52 = vsub.s32 3, %v1464_v30 }
 0x13b   :  { %v350_v54 = vrot.slane %v349_v37, 4 }
 0x13d   :  { %v351_v56 = vadd.f32 %v350_v54, %v349_v37  ;;  %v714_v37 = vld [vmem:[#allocation2 + $0x20] sm:$0xff]  ;;  %v713_v54 = vld [vmem:[#allocation2 + $0x18] sm:$0xff] }
 0x13f   :  { %v352_v57 = vrot.slane %v351_v56, 2 }
 0x141   :  { %v353_v58 = vadd.f32 %v352_v57, %v351_v56  ;;  %v1595_v56 = vrot.slane %v1473_v34, %v423_v52 }
 0x143   :  { %v354_v59 = vrot.slane %v353_v58, 1 }
 0x145   :  { %v355_v61 = vadd.f32 %v354_v59, %v353_v58  ;;  %v712_v58 = vld [vmem:[#allocation2 + $0x10] sm:$0xff]  ;;  %v711_v59 = vld [vmem:[#allocation2 + $0x8] sm:$0xff] }
 0x147   :  { %v356_v62 = vmul.f32 0.0078125, %v355_v61 }
 0x149   :  { %v357_v0 = vadd.f32 1e-05, %v356_v62  ;;  %v710_v62 = vld [vmem:[#allocation2] sm:$0xff] }
 0x14b   :  { %1241 = vrsqrt.f32 %v357_v0 }
 0x158   :  { %v1242_v1 = vpop.eup %1241 }
 0x159   :  { %v359_v2 = vmul.f32 %v1242_v1, %v1473_v34 }
 0x15b   :  { %v360_v5 = vmul.f32 %v359_v2, %v302_v51  ;;  %v368_v8 = vrot.slane %v359_v2, %v367_v3 }
 0x15d   :  { %v362_v6 = vrot.slane %v360_v5, 7  ;;  %v369_v13 = vmul.f32 %v368_v8, %v1495_v46  ;;  %v370_v14 = vmul.f32 %v368_v8, %v1497_v48  ;;  %v371_v18 = vmul.f32 %v368_v8, %v1503_v53 }
 0x15e   :  { %v372_v51 = vmul.f32 %v368_v8, %v1505_v55  ;;  %v373_v21 = vmul.f32 %v368_v8, %v1510_v60  ;;  %v374_v25 = vmul.f32 %v368_v8, %v1513_v63  ;;  %v375_v46 = vmul.f32 %v368_v8, %v1518_v4 }
 0x15f   :  { %v364_v10 = vsub.f32 %v1473_v34, %v362_v6  ;;  %v376_v53 = vmul.f32 %v368_v8, %v1521_v7  ;;  %v377_v27 = vmul.f32 %v368_v8, %v1526_v12  ;;  %v378_v60 = vmul.f32 %v368_v8, %v1529_v15 }
 0x160   :  { %v379_v31 = vmul.f32 %v368_v8, %v1534_v20  ;;  %v380_v4 = vmul.f32 %v368_v8, %v1537_v23  ;;  %v381_v35 = vmul.f32 %v368_v8, %v1542_v28  ;;  %v382_v12 = vmul.f32 %v368_v8, %v1545_v32  ;;  %v725_v23 = vld [vmem:[#allocation2 + $0x78] sm:$0xff]  ;;  %v724_v28 = vld [vmem:[#allocation2 + $0x70] sm:$0xff]  ;;  %v723_v32 = vld [vmem:[#allocation2 + $0x68] sm:$0xff] }
 0x161   :  { %v388_v11 = vrot.slane %v364_v10, %v387_v9  ;;  %v383_v39 = vmul.f32 %v368_v8, %v1550_v38  ;;  %v384_v20 = vmul.f32 %v368_v8, %v1553_v40  ;;  %1149 = vmatprep.subr.mxu0 %v725_v23  ;;  %1205 = vmatprep.subr.mxu1 %v725_v23  ;;  %v722_v38 = vld [vmem:[#allocation2 + $0x60] sm:$0xff]  ;;  %v721_v40 = vld [vmem:[#allocation2 + $0x58] sm:$0xff] }
 0x162   :  { %1150 = vmatpush3.msra.mxu0 %v725_v23 }
 0x163   :  { %v389_v16 = vadd.f32 %v388_v11, %v369_v13  ;;  %v390_v17 = vadd.f32 %v388_v11, %v370_v14  ;;  %v391_v19 = vadd.f32 %v388_v11, %v371_v18  ;;  %v392_v22 = vadd.f32 %v388_v11, %v372_v51  ;;  %1151 = vmatprep.subr.mxu0 %v724_v28 }
 0x164   :  { %v393_v24 = vadd.f32 %v388_v11, %v373_v21  ;;  %v394_v48 = vadd.f32 %v388_v11, %v374_v25  ;;  %v395_v26 = vadd.f32 %v388_v11, %v375_v46  ;;  %v396_v55 = vadd.f32 %v388_v11, %v376_v53  ;;  %1152 = vmatpush3.msra.mxu0 %v724_v28 }
 0x165   :  { %1125 = vmatprep.mubr.f32.mxu1 %v389_v16  ;;  %v397_v29 = vadd.f32 %v388_v11, %v377_v27  ;;  %v398_v63 = vadd.f32 %v388_v11, %v378_v60  ;;  %v399_v33 = vadd.f32 %v388_v11, %v379_v31  ;;  %v400_v7 = vadd.f32 %v388_v11, %v380_v4 }
 0x166   :  { %1126 = vmatmul.mubr.f32.vlgmr.msra.gmra.mxu1 %v390_v17  ;;  %v401_v36 = vadd.f32 %v388_v11, %v381_v35  ;;  %v402_v15 = vadd.f32 %v388_v11, %v382_v12  ;;  %v403_v41 = vadd.f32 %v388_v11, %v383_v39  ;;  %v404_v42 = vadd.f32 %v388_v11, %v384_v20 }
 0x167   :  { %1128 = vmatprep.mubr.f32.mxu1 %v391_v19  ;;  %1221 = vmatpush3.msra.mxu1 %v725_v23 }
 0x168   :  { %1206 = vmatprep.subr.mxu1 %v724_v28  ;;  %1153 = vmatprep.subr.mxu0 %v723_v32 }
 0x169   :  { %1222 = vmatpush3.msra.mxu1 %v724_v28  ;;  %1154 = vmatpush3.msra.mxu0 %v723_v32 }
 0x16a   :  { %1129 = vmatmul.mubr.f32.gmra.mxu1 %v392_v22  ;;  %1207 = vmatprep.subr.mxu1 %v723_v32 }
 0x16b   :  { %1131 = vmatprep.mubr.f32.mxu1 %v393_v24  ;;  %1223 = vmatpush3.msra.mxu1 %v723_v32 }
 0x16c   :  { %1155 = vmatprep.subr.mxu0 %v722_v38  ;;  %1208 = vmatprep.subr.mxu1 %v722_v38 }
 0x16d   :  { %1156 = vmatpush3.msra.mxu0 %v722_v38  ;;  %1224 = vmatpush3.msra.mxu1 %v722_v38 }
 0x16e   :  { %1132 = vmatmul.mubr.f32.gmra.mxu1 %v394_v48  ;;  %1157 = vmatprep.subr.mxu0 %v721_v40 }
 0x16f   :  { %1134 = vmatprep.mubr.f32.mxu1 %v395_v26  ;;  %1209 = vmatprep.subr.mxu1 %v721_v40 }
 0x170   :  { %1158 = vmatpush3.msra.mxu0 %v721_v40  ;;  %1225 = vmatpush3.msra.mxu1 %v721_v40 }
 0x171   :  { %1159 = vmatprep.subr.mxu0 %v720_v43  ;;  %1210 = vmatprep.subr.mxu1 %v720_v43 }
 0x172   :  { %1135 = vmatmul.mubr.f32.gmra.mxu1 %v396_v55  ;;  %1160 = vmatpush3.msra.mxu0 %v720_v43 }
 0x173   :  { %1137 = vmatprep.mubr.f32.mxu1 %v397_v29  ;;  %1226 = vmatpush3.msra.mxu1 %v720_v43 }
 0x174   :  { %1161 = vmatprep.subr.mxu0 %v719_v44  ;;  %1211 = vmatprep.subr.mxu1 %v719_v44 }
 0x175   :  { %1162 = vmatpush3.msra.mxu0 %v719_v44  ;;  %1227 = vmatpush3.msra.mxu1 %v719_v44 }
 0x176   :  { %1138 = vmatmul.mubr.f32.gmra.mxu1 %v398_v63  ;;  %1163 = vmatprep.subr.mxu0 %v718_v45 }
 0x177   :  { %1140 = vmatprep.mubr.f32.mxu1 %v399_v33  ;;  %1212 = vmatprep.subr.mxu1 %v718_v45 }
 0x178   :  { %1164 = vmatpush3.msra.mxu0 %v718_v45  ;;  %1228 = vmatpush3.msra.mxu1 %v718_v45 }
 0x179   :  { %1165 = vmatprep.subr.mxu0 %v717_v47  ;;  %1213 = vmatprep.subr.mxu1 %v717_v47 }
 0x17a   :  { %1141 = vmatmul.mubr.f32.gmra.mxu1 %v400_v7  ;;  %1166 = vmatpush3.msra.mxu0 %v717_v47 }
 0x17b   :  { %1143 = vmatprep.mubr.f32.mxu1 %v401_v36  ;;  %1229 = vmatpush3.msra.mxu1 %v717_v47 }
 0x17c   :  { %1167 = vmatprep.subr.mxu0 %v716_v49  ;;  %1214 = vmatprep.subr.mxu1 %v716_v49 }
 0x17d   :  { %1168 = vmatpush3.msra.mxu0 %v716_v49  ;;  %1230 = vmatpush3.msra.mxu1 %v716_v49 }
 0x17e   :  { %1144 = vmatmul.mubr.f32.gmra.mxu1 %v402_v15  ;;  %1169 = vmatprep.subr.mxu0 %v715_v50 }
 0x17f   :  { %1146 = vmatprep.mubr.f32.mxu1 %v403_v41  ;;  %1215 = vmatprep.subr.mxu1 %v715_v50 }
 0x180   :  { %1170 = vmatpush3.msra.mxu0 %v715_v50  ;;  %1231 = vmatpush3.msra.mxu1 %v715_v50 }
 0x181   :  { %1171 = vmatprep.subr.mxu0 %v714_v37  ;;  %1216 = vmatprep.subr.mxu1 %v714_v37 }
 0x182   :  { %1147 = vmatmul.mubr.f32.gmra.mxu1 %v404_v42  ;;  %1172 = vmatpush3.msra.mxu0 %v714_v37 }
 0x183   :  { %1232 = vmatpush3.msra.mxu1 %v714_v37  ;;  %1173 = vmatprep.subr.mxu0 %v713_v54 }
 0x184   :  { %1217 = vmatprep.subr.mxu1 %v713_v54  ;;  %1174 = vmatpush3.msra.mxu0 %v713_v54 }
 0x185   :  { %1233 = vmatpush3.msra.mxu1 %v713_v54  ;;  %1175 = vmatprep.subr.mxu0 %v712_v58 }
 0x186   :  { %1218 = vmatprep.subr.mxu1 %v712_v58  ;;  %1176 = vmatpush3.msra.mxu0 %v712_v58 }
 0x187   :  { %1234 = vmatpush3.msra.mxu1 %v712_v58  ;;  %1177 = vmatprep.subr.mxu0 %v711_v59 }
 0x188   :  { %1219 = vmatprep.subr.mxu1 %v711_v59  ;;  %1178 = vmatpush3.msra.mxu0 %v711_v59 }
 0x189   :  { %1235 = vmatpush3.msra.mxu1 %v711_v59  ;;  %1179 = vmatprep.subr.mxu0 %v710_v62 }
 0x18a   :  { %1220 = vmatprep.subr.mxu1 %v710_v62  ;;  %1180 = vmatpush3.msra.mxu0 %v710_v62 }
 0x18b   :  { %1236 = vmatpush3.msra.mxu1 %v710_v62 }
 0x226   :  { %v1127_v57 = vpop.f32.mrf.mxu1 }
 0x227   :  { %v497_v0 = vadd.f32 %v1127_v57, %v1595_v56 }
 0x228   :  { %v491_v61 = vpop.f32.mrf.mxu1 }
 0x229   :  { %v492_v1 = vadd.f32 %v491_v61, %v1595_v56  ;;  %v1601_v6 = vmax.f32 %v497_v0, 0.0 }
 0x22a   :  { %v1130_v2 = vpop.f32.mrf.mxu1 }
 0x22b   :  { %v1599_v3 = vmax.f32 %v492_v1, 0.0  ;;  %v507_v8 = vadd.f32 %v1130_v2, %v1595_v56 }
 0x22c   :  { %v501_v5 = vpop.f32.mrf.mxu1 }
 0x22d   :  { %v502_v9 = vadd.f32 %v501_v5, %v1595_v56  ;;  %v586_v11 = vadd.f32 %v1601_v6, %v1599_v3  ;;  %v1609_v16 = vmax.f32 %v507_v8, 0.0 }
 0x22e   :  { %v1133_v10 = vpop.f32.mrf.mxu1 }
 0x22f   :  { %v1607_v13 = vmax.f32 %v502_v9, 0.0  ;;  %v517_v18 = vadd.f32 %v1133_v10, %v1595_v56 }
 0x230   :  { %v511_v14 = vpop.f32.mrf.mxu1 }
 0x231   :  { %v587_v17 = vadd.f32 %v586_v11, %v1607_v13  ;;  %v512_v19 = vadd.f32 %v511_v14, %v1595_v56  ;;  %v1617_v25 = vmax.f32 %v517_v18, 0.0 }
 0x232   :  { %v1136_v51 = vpop.f32.mrf.mxu1 }
 0x233   :  { %v1614_v21 = vmax.f32 %v512_v19, 0.0  ;;  %v588_v22 = vadd.f32 %v587_v17, %v1609_v16  ;;  %v527_v48 = vadd.f32 %v1136_v51, %v1595_v56 }
 0x234   :  { %v521_v24 = vpop.f32.mrf.mxu1 }
 0x235   :  { %v589_v46 = vadd.f32 %v588_v22, %v1614_v21  ;;  %v522_v26 = vadd.f32 %v521_v24, %v1595_v56  ;;  %v1625_v60 = vmax.f32 %v527_v48, 0.0 }
 0x236   :  { %v1139_v53 = vpop.f32.mrf.mxu1 }
 0x237   :  { %v1622_v27 = vmax.f32 %v522_v26, 0.0  ;;  %v590_v55 = vadd.f32 %v589_v46, %v1617_v25  ;;  %v537_v63 = vadd.f32 %v1139_v53, %v1595_v56 }
 0x238   :  { %v531_v29 = vpop.f32.mrf.mxu1 }
 0x239   :  { %v591_v31 = vadd.f32 %v590_v55, %v1622_v27  ;;  %v532_v33 = vadd.f32 %v531_v29, %v1595_v56  ;;  %v1633_v12 = vmax.f32 %v537_v63, 0.0 }
 0x23a   :  { %v1142_v4 = vpop.f32.mrf.mxu1 }
 0x23b   :  { %v1630_v35 = vmax.f32 %v532_v33, 0.0  ;;  %v592_v7 = vadd.f32 %v591_v31, %v1625_v60  ;;  %v547_v15 = vadd.f32 %v1142_v4, %v1595_v56 }
 0x23c   :  { %v541_v36 = vpop.f32.mrf.mxu1 }
 0x23d   :  { %v593_v39 = vadd.f32 %v592_v7, %v1630_v35  ;;  %v542_v41 = vadd.f32 %v541_v36, %v1595_v56  ;;  %v1641_v32 = vmax.f32 %v547_v15, 0.0 }
 0x23e   :  { %v1145_v20 = vpop.f32.mrf.mxu1 }
 0x23f   :  { %v1638_v42 = vmax.f32 %v542_v41, 0.0  ;;  %v594_v23 = vadd.f32 %v593_v39, %v1633_v12  ;;  %v557_v40 = vadd.f32 %v1145_v20, %v1595_v56 }
 0x240   :  { %v551_v28 = vpop.f32.mrf.mxu1 }
 0x241   :  { %v595_v38 = vadd.f32 %v594_v23, %v1638_v42  ;;  %v552_v43 = vadd.f32 %v551_v28, %v1595_v56  ;;  %v1649_v50 = vmax.f32 %v557_v40, 0.0 }
 0x242   :  { %v1148_v44 = vpop.f32.mrf.mxu1 }
 0x243   :  { %v1646_v45 = vmax.f32 %v552_v43, 0.0  ;;  %v596_v47 = vadd.f32 %v595_v38, %v1641_v32  ;;  %v567_v37 = vadd.f32 %v1148_v44, %v1595_v56 }
 0x244   :  { %v561_v49 = vpop.f32.mrf.mxu1 }
 0x245   :  { %v597_v52 = vadd.f32 %v596_v47, %v1646_v45  ;;  %v562_v54 = vadd.f32 %v561_v49, %v1595_v56  ;;  %v1657_v59 = vmax.f32 %v567_v37, 0.0 }
 0x247   :  { %v1654_v57 = vmax.f32 %v562_v54, 0.0  ;;  %v598_v58 = vadd.f32 %v597_v52, %v1649_v50 }
 0x249   :  { %v599_v61 = vadd.f32 %v598_v58, %v1654_v57 }
 0x24b   :  { %v600_v62 = vadd.f32 %v599_v61, %v1657_v59 }
 0x24d   :  { %v601_v0 = vrot.slane %v600_v62, 4 }
 0x24f   :  { %v602_v1 = vadd.f32 %v601_v0, %v600_v62 }
 0x251   :  { %v603_v2 = vrot.slane %v602_v1, 2 }
 0x253   :  { %v604_v5 = vadd.f32 %v603_v2, %v602_v1 }
 0x255   :  { %v605_v8 = vrot.slane %v604_v5, 1 }
 0x257   :  { %v606_v9 = vadd.f32 %v605_v8, %v604_v5 }
 0x259   :  { %v607_v10 = vmul.f32 0.0078125, %v606_v9 }
 0x25b   :  { %v608_v11 = vsub.f32 %v1599_v3, %v607_v10  ;;  %v609_v56 = vsub.f32 %v1601_v6, %v607_v10  ;;  %v610_v14 = vsub.f32 %v1607_v13, %v607_v10  ;;  %v611_v19 = vsub.f32 %v1609_v16, %v607_v10 }
 0x25c   :  { %v612_v51 = vsub.f32 %v1614_v21, %v607_v10  ;;  %v613_v46 = vsub.f32 %v1617_v25, %v607_v10  ;;  %v614_v53 = vsub.f32 %v1622_v27, %v607_v10  ;;  %v615_v31 = vsub.f32 %v1625_v60, %v607_v10 }
 0x25d   :  { %v624_v17 = vmul.f32 %v608_v11, %v608_v11  ;;  %v625_v18 = vmul.f32 %v609_v56, %v609_v56  ;;  %v626_v22 = vmul.f32 %v610_v14, %v610_v14  ;;  %v627_v48 = vmul.f32 %v611_v19, %v611_v19 }
 0x25e   :  { %v628_v55 = vmul.f32 %v612_v51, %v612_v51  ;;  %v629_v63 = vmul.f32 %v613_v46, %v613_v46  ;;  %v616_v4 = vsub.f32 %v1630_v35, %v607_v10  ;;  %v630_v7 = vmul.f32 %v614_v53, %v614_v53 }
 0x25f   :  { %v640_v24 = vadd.f32 %v625_v18, %v624_v17  ;;  %v617_v39 = vsub.f32 %v1633_v12, %v607_v10  ;;  %v631_v15 = vmul.f32 %v615_v31, %v615_v31  ;;  %v618_v20 = vsub.f32 %v1638_v42, %v607_v10 }
 0x260   :  { %v632_v23 = vmul.f32 %v616_v4, %v616_v4  ;;  %v619_v38 = vsub.f32 %v1641_v32, %v607_v10  ;;  %v620_v44 = vsub.f32 %v1646_v45, %v607_v10  ;;  %v621_v52 = vsub.f32 %v1649_v50, %v607_v10 }
 0x261   :  { %v641_v26 = vadd.f32 %v640_v24, %v626_v22  ;;  %v633_v40 = vmul.f32 %v617_v39, %v617_v39  ;;  %v634_v47 = vmul.f32 %v618_v20, %v618_v20  ;;  %v622_v58 = vsub.f32 %v1654_v57, %v607_v10 }
 0x262   :  { %v635_v37 = vmul.f32 %v619_v38, %v619_v38  ;;  %v636_v61 = vmul.f32 %v620_v44, %v620_v44  ;;  %v623_v0 = vsub.f32 %v1657_v59, %v607_v10  ;;  %v637_v1 = vmul.f32 %v621_v52, %v621_v52 }
 0x263   :  { %v642_v29 = vadd.f32 %v641_v26, %v627_v48  ;;  %v638_v5 = vmul.f32 %v622_v58, %v622_v58  ;;  %v672_v26 = vsub.s32 4, %v1464_v30 }
 0x264   :  { %v639_v9 = vmul.f32 %v623_v0, %v623_v0 }
 0x265   :  { %v643_v33 = vadd.f32 %v642_v29, %v628_v55 }
 0x267   :  { %v644_v36 = vadd.f32 %v643_v33, %v629_v63  ;;  %v692_v63 = vsub.s32 5, %v1464_v30 }
 0x269   :  { %v645_v41 = vadd.f32 %v644_v36, %v630_v7 }
 0x26b   :  { %v646_v28 = vadd.f32 %v645_v41, %v631_v15 }
 0x26d   :  { %v647_v43 = vadd.f32 %v646_v28, %v632_v23 }
 0x26f   :  { %v648_v49 = vadd.f32 %v647_v43, %v633_v40 }
 0x271   :  { %v649_v54 = vadd.f32 %v648_v49, %v634_v47 }
 0x273   :  { %v650_v62 = vadd.f32 %v649_v54, %v635_v37 }
 0x275   :  { %v651_v2 = vadd.f32 %v650_v62, %v636_v61 }
 0x277   :  { %v652_v8 = vadd.f32 %v651_v2, %v637_v1 }
 0x279   :  { %v653_v11 = vadd.f32 %v652_v8, %v638_v5 }
 0x27b   :  { %v654_v56 = vadd.f32 %v653_v11, %v639_v9 }
 0x27d   :  { %v655_v14 = vrot.slane %v654_v56, 4 }
 0x27f   :  { %v656_v17 = vadd.f32 %v655_v14, %v654_v56 }
 0x281   :  { %v657_v18 = vrot.slane %v656_v17, 2 }
 0x283   :  { %v658_v19 = vadd.f32 %v657_v18, %v656_v17 }
 0x285   :  { %v659_v51 = vrot.slane %v658_v19, 1 }
 0x287   :  { %v660_v22 = vadd.f32 %v659_v51, %v658_v19 }
 0x289   :  { %v661_v24 = vmul.f32 0.0078125, %v660_v22 }
 0x28b   :  { %v662_v46 = vadd.f32 1e-05, %v661_v24 }
 0x28d   :  { %1243 = vrsqrt.f32 %v662_v46 }
 0x29a   :  { %v1244_v48 = vpop.eup %1243 }
 0x29b   :  { %v664_v53 = vmul.f32 %v1244_v48, %v1473_v34 }
 0x29d   :  { %v665_v55 = vmul.f32 %v664_v53, %v607_v10  ;;  %v673_v29 = vrot.slane %v664_v53, %v672_v26 }
 0x29f   :  { %v667_v31 = vrot.slane %v665_v55, 7  ;;  %v688_v4 = vmul.f32 %v673_v29, %v1654_v57  ;;  %v674_v36 = vmul.f32 %v673_v29, %v1599_v3  ;;  %v675_v39 = vmul.f32 %v673_v29, %v1601_v6 }
 0x2a0   :  { %v689_v15 = vmul.f32 %v673_v29, %v1657_v59  ;;  %v676_v41 = vmul.f32 %v673_v29, %v1607_v13  ;;  %v677_v57 = vmul.f32 %v673_v29, %v1609_v16  ;;  %v678_v3 = vmul.f32 %v673_v29, %v1614_v21 }
 0x2a1   :  { %v669_v33 = vsub.f32 %v1473_v34, %v667_v31  ;;  %v679_v59 = vmul.f32 %v673_v29, %v1617_v25  ;;  %v680_v13 = vmul.f32 %v673_v29, %v1622_v27  ;;  %v681_v47 = vmul.f32 %v673_v29, %v1625_v60 }
 0x2a2   :  { %v682_v49 = vmul.f32 %v673_v29, %v1630_v35  ;;  %v683_v21 = vmul.f32 %v673_v29, %v1633_v12  ;;  %v684_v37 = vmul.f32 %v673_v29, %v1638_v42  ;;  %v685_v27 = vmul.f32 %v673_v29, %v1641_v32 }
 0x2a3   :  { %v693_v7 = vrot.slane %v669_v33, %v692_v63  ;;  %v686_v58 = vmul.f32 %v673_v29, %v1646_v45  ;;  %v687_v35 = vmul.f32 %v673_v29, %v1649_v50  ;;  %v728_v12 = vsub.s32 6, %v1464_v30 }
 0x2a5   :  { %v694_v20 = vadd.f32 %v693_v7, %v674_v36  ;;  %v708_v23 = vadd.f32 %v693_v7, %v688_v4  ;;  %v695_v10 = vadd.f32 %v693_v7, %v675_v39  ;;  %v709_v28 = vadd.f32 %v693_v7, %v689_v15 }
 0x2a6   :  { %v696_v38 = vadd.f32 %v693_v7, %v676_v41  ;;  %v697_v40 = vadd.f32 %v693_v7, %v677_v57  ;;  %v698_v6 = vadd.f32 %v693_v7, %v678_v3  ;;  %v699_v43 = vadd.f32 %v693_v7, %v679_v59 }
 0x2a7   :  { %1181 = vmatprep.mubr.f32.mxu0 %v694_v20  ;;  %1202 = vmatprep.mubr.f32.mxu1 %v708_v23  ;;  %v700_v44 = vadd.f32 %v693_v7, %v680_v13  ;;  %v701_v16 = vadd.f32 %v693_v7, %v681_v47  ;;  %v702_v52 = vadd.f32 %v693_v7, %v682_v49 }
 0x2a8   :  { %1182 = vmatmul.mubr.f32.vlgmr.msra.gmra.mxu0 %v695_v10  ;;  %1203 = vmatmul.mubr.f32.vlgmr.msra.gmra.mxu1 %v709_v28  ;;  %v703_v25 = vadd.f32 %v693_v7, %v683_v21  ;;  %v704_v54 = vadd.f32 %v693_v7, %v684_v37  ;;  %v705_v60 = vadd.f32 %v693_v7, %v685_v27 }
 0x2a9   :  { %1184 = vmatprep.mubr.f32.mxu0 %v696_v38  ;;  %v706_v61 = vadd.f32 %v693_v7, %v686_v58  ;;  %v707_v62 = vadd.f32 %v693_v7, %v687_v35  ;;  %v1699_v42 = vrot.slane %v1473_v34, %v728_v12 }
 0x2ac   :  { %1185 = vmatmul.mubr.f32.gmra.mxu0 %v697_v40 }
 0x2ad   :  { %1187 = vmatprep.mubr.f32.mxu0 %v698_v6 }
 0x2b0   :  { %1188 = vmatmul.mubr.f32.gmra.mxu0 %v699_v43 }
 0x2b1   :  { %1190 = vmatprep.mubr.f32.mxu0 %v700_v44 }
 0x2b4   :  { %1191 = vmatmul.mubr.f32.gmra.mxu0 %v701_v16 }
 0x2b5   :  { %1193 = vmatprep.mubr.f32.mxu0 %v702_v52 }
 0x2b8   :  { %1194 = vmatmul.mubr.f32.gmra.mxu0 %v703_v25 }
 0x2b9   :  { %1196 = vmatprep.mubr.f32.mxu0 %v704_v54 }
 0x2bc   :  { %1197 = vmatmul.mubr.f32.gmra.mxu0 %v705_v60 }
 0x2bd   :  { %1199 = vmatprep.mubr.f32.mxu0 %v706_v61 }
 0x2c0   :  { %1200 = vmatmul.mubr.f32.gmra.mxu0 %v707_v62 }
 0x368   :  { %v1183_v0 = vpop.f32.mrf.mxu0  ;;  %v1204_v1 = vpop.f32.mrf.mxu1 }
 0x369   :  { %v802_v32 = vadd.f32 %v1183_v0, %v1699_v42  ;;  %v872_v2 = vadd.f32 %v1204_v1, %v1699_v42 }
 0x36a   :  { %v796_v45 = vpop.f32.mrf.mxu0  ;;  %v866_v5 = vpop.f32.mrf.mxu1 }
 0x36b   :  { %v876_v8 = vmul.f32 0.5, %v802_v32  ;;  %v890_v9 = vmul.f32 0.5, %v872_v2  ;;  %v797_v50 = vadd.f32 %v796_v45, %v1699_v42  ;;  %v867_v11 = vadd.f32 %v866_v5, %v1699_v42 }
 0x36c   :  { %v1186_v56 = vpop.f32.mrf.mxu0 }
 0x36d   :  { %1245 = vtanh.f32 %v876_v8  ;;  %v875_v30 = vmul.f32 0.5, %v797_v50  ;;  %v889_v14 = vmul.f32 0.5, %v867_v11  ;;  %v812_v34 = vadd.f32 %v1186_v56, %v1699_v42 }
 0x36e   :  { %1247 = vtanh.f32 %v890_v9  ;;  %v806_v17 = vpop.f32.mrf.mxu0 }
 0x36f   :  { %1249 = vtanh.f32 %v875_v30  ;;  %v878_v18 = vmul.f32 0.5, %v812_v34  ;;  %v807_v19 = vadd.f32 %v806_v17, %v1699_v42 }
 0x370   :  { %1251 = vtanh.f32 %v889_v14  ;;  %v1189_v51 = vpop.f32.mrf.mxu0 }
 0x371   :  { %1253 = vtanh.f32 %v878_v18  ;;  %v877_v22 = vmul.f32 0.5, %v807_v19  ;;  %v822_v24 = vadd.f32 %v1189_v51, %v1699_v42 }
 0x372   :  { %v816_v46 = vpop.f32.mrf.mxu0 }
 0x373   :  { %1255 = vtanh.f32 %v877_v22  ;;  %v880_v48 = vmul.f32 0.5, %v822_v24  ;;  %v817_v26 = vadd.f32 %v816_v46, %v1699_v42 }
 0x374   :  { %v1192_v53 = vpop.f32.mrf.mxu0 }
 0x375   :  { %1257 = vtanh.f32 %v880_v48  ;;  %v879_v55 = vmul.f32 0.5, %v817_v26  ;;  %v832_v29 = vadd.f32 %v1192_v53, %v1699_v42 }
 0x376   :  { %v826_v31 = vpop.f32.mrf.mxu0 }
 0x377   :  { %1259 = vtanh.f32 %v879_v55  ;;  %v882_v63 = vmul.f32 0.5, %v832_v29  ;;  %v827_v33 = vadd.f32 %v826_v31, %v1699_v42 }
 0x378   :  { %v1195_v4 = vpop.f32.mrf.mxu0 }
 0x379   :  { %1261 = vtanh.f32 %v882_v63  ;;  %v881_v7 = vmul.f32 0.5, %v827_v33  ;;  %v842_v36 = vadd.f32 %v1195_v4, %v1699_v42 }
 0x37a   :  { %v1246_v39 = vpop.eup %1245  ;;  %v836_v15 = vpop.f32.mrf.mxu0 }
 0x37b   :  { %v1248_v41 = vpop.eup %1247  ;;  %v908_v20 = vmul.f32 0.5, %v1246_v39  ;;  %1263 = vtanh.f32 %v881_v7  ;;  %v884_v23 = vmul.f32 0.5, %v842_v36  ;;  %v837_v10 = vadd.f32 %v836_v15, %v1699_v42 }
 0x37c   :  { %v1250_v28 = vpop.eup %1249  ;;  %v922_v38 = vmul.f32 0.5, %v1248_v41  ;;  %v1198_v57 = vpop.f32.mrf.mxu0 }
 0x37d   :  { %v1252_v3 = vpop.eup %1251  ;;  %v924_v40 = vadd.f32 0.5, %v908_v20  ;;  %v907_v6 = vmul.f32 0.5, %v1250_v28  ;;  %1265 = vtanh.f32 %v884_v23  ;;  %v883_v59 = vmul.f32 0.5, %v837_v10 }
 0x37e   :  { %v1254_v13 = vpop.eup %1253  ;;  %v938_v43 = vadd.f32 0.5, %v922_v38  ;;  %v921_v44 = vmul.f32 0.5, %v1252_v3  ;;  %v852_v47 = vadd.f32 %v1198_v57, %v1699_v42  ;;  %v846_v49 = vpop.f32.mrf.mxu0 }
 0x37f   :  { %940 = vst [vmem:[%s1770_s5 + $0x8] sm:$0xff] %v924_v40  ;;  %v923_v16 = vadd.f32 0.5, %v907_v6  ;;  %v910_v52 = vmul.f32 0.5, %v1254_v13  ;;  %1267 = vtanh.f32 %v883_v59  ;;  %v847_v21 = vadd.f32 %v846_v49, %v1699_v42 }
 0x380   :  { %v1256_v37 = vpop.eup %1255  ;;  %954 = vst [vmem:[%s1770_s5 + $0x78] sm:$0xff] %v938_v43  ;;  %v937_v25 = vadd.f32 0.5, %v921_v44  ;;  %v886_v54 = vmul.f32 0.5, %v852_v47  ;;  %v1201_v27 = vpop.f32.mrf.mxu0 }
 0x381   :  { %939 = vst [vmem:[%s1770_s5] sm:$0xff] %v923_v16  ;;  %v926_v58 = vadd.f32 0.5, %v910_v52  ;;  %v909_v60 = vmul.f32 0.5, %v1256_v37  ;;  %v885_v61 = vmul.f32 0.5, %v847_v21  ;;  %v862_v35 = vadd.f32 %v1201_v27, %v1699_v42 }
 0x382   :  { %v1258_v62 = vpop.eup %1257  ;;  %953 = vst [vmem:[%s1770_s5 + $0x70] sm:$0xff] %v937_v25  ;;  %1269 = vtanh.f32 %v886_v54  ;;  %v856_v12 = vpop.f32.mrf.mxu0 }
 0x383   :  { %942 = vst [vmem:[%s1770_s5 + $0x18] sm:$0xff] %v926_v58  ;;  %v925_v0 = vadd.f32 0.5, %v909_v60  ;;  %v912_v1 = vmul.f32 0.5, %v1258_v62  ;;  %1271 = vtanh.f32 %v885_v61  ;;  %v888_v32 = vmul.f32 0.5, %v862_v35 }
 0x384   :  { %v1260_v2 = vpop.eup %1259  ;;  %v857_v45 = vadd.f32 %v856_v12, %v1699_v42 }
 0x385   :  { %941 = vst [vmem:[%s1770_s5 + $0x10] sm:$0xff] %v925_v0  ;;  %v928_v5 = vadd.f32 0.5, %v912_v1  ;;  %v911_v8 = vmul.f32 0.5, %v1260_v2  ;;  %1273 = vtanh.f32 %v888_v32 }
 0x386   :  { %v1262_v9 = vpop.eup %1261  ;;  %v887_v50 = vmul.f32 0.5, %v857_v45 }
 0x387   :  { %944 = vst [vmem:[%s1770_s5 + $0x28] sm:$0xff] %v928_v5  ;;  %v927_v11 = vadd.f32 0.5, %v911_v8  ;;  %v914_v56 = vmul.f32 0.5, %v1262_v9 }
 0x388   :  { %v1264_v30 = vpop.eup %1263  ;;  %1275 = vtanh.f32 %v887_v50 }
 0x389   :  { %943 = vst [vmem:[%s1770_s5 + $0x20] sm:$0xff] %v927_v11  ;;  %v930_v42 = vadd.f32 0.5, %v914_v56  ;;  %v913_v14 = vmul.f32 0.5, %v1264_v30 }
 0x38a   :  { %v1266_v34 = vpop.eup %1265 }
 0x38b   :  { %946 = vst [vmem:[%s1770_s5 + $0x38] sm:$0xff] %v930_v42  ;;  %v929_v17 = vadd.f32 0.5, %v913_v14  ;;  %v916_v18 = vmul.f32 0.5, %v1266_v34 }
 0x38c   :  { %v1268_v19 = vpop.eup %1267 }
 0x38d   :  { %945 = vst [vmem:[%s1770_s5 + $0x30] sm:$0xff] %v929_v17  ;;  %v932_v51 = vadd.f32 0.5, %v916_v18  ;;  %v915_v22 = vmul.f32 0.5, %v1268_v19 }
 0x38f   :  { %v1270_v24 = vpop.eup %1269  ;;  %948 = vst [vmem:[%s1770_s5 + $0x48] sm:$0xff] %v932_v51  ;;  %v931_v46 = vadd.f32 0.5, %v915_v22 }
 0x390   :  { %v1272_v48 = vpop.eup %1271  ;;  %v918_v26 = vmul.f32 0.5, %v1270_v24 }
 0x391   :  { %947 = vst [vmem:[%s1770_s5 + $0x40] sm:$0xff] %v931_v46  ;;  %v917_v53 = vmul.f32 0.5, %v1272_v48 }
 0x392   :  { %v1274_v55 = vpop.eup %1273  ;;  %v934_v29 = vadd.f32 0.5, %v918_v26 }
 0x393   :  { %v933_v31 = vadd.f32 0.5, %v917_v53  ;;  %v920_v63 = vmul.f32 0.5, %v1274_v55 }
 0x394   :  { %950 = vst [vmem:[%s1770_s5 + $0x58] sm:$0xff] %v934_v29 }
 0x395   :  { %v1276_v33 = vpop.eup %1275  ;;  %949 = vst [vmem:[%s1770_s5 + $0x50] sm:$0xff] %v933_v31  ;;  %v936_v4 = vadd.f32 0.5, %v920_v63 }
 0x396   :  { %v919_v7 = vmul.f32 0.5, %v1276_v33 }
 0x397   :  { %952 = vst [vmem:[%s1770_s5 + $0x68] sm:$0xff] %v936_v4 }
 0x398   :  { %v935_v36 = vadd.f32 0.5, %v919_v7 }
 0x39a   :  { %951 = vst [vmem:[%s1770_s5 + $0x60] sm:$0xff] %v935_v36 }
 0x39b   :  { %959 = vsyncpa [#allocation3], 1 }
 0x39c   :  { %960 = vsyncpa [#allocation5], 1 }

</bundles_post_ra>
